<compile_context>
chip_gen: v7x
topology: tpu7x:2x2x1
jax: 0.10.0
libtpu: 0.0.40
codegen_flags: <defaults>
</compile_context>

<pallas_src>
import functools

import jax
import jax.numpy as jnp
import numpy as np
from jax.experimental import pallas as pl
from jax.experimental.pallas import tpu as pltpu


def _round_up(x, m):
    return ((x + m - 1) // m) * m


def _triplet_loss_kernel(idx_ref, batch_ref, out_ref, acc_ref, *,
                         num_triplets, margin, t_tile):
    """One grid step handles a tile of `t_tile` triplets, fully vectorized.

    idx_ref  : VMEM i32[t_tile, 3]  (anchor, positive, negative) row indices
    batch_ref: VMEM f32[N, D]       full embedding batch (resident block)
    out_ref  : VMEM f32[1, 1]       mean triplet loss (stored on last tile)
    acc_ref  : VMEM f32[t_tile, 1]  per-slot running loss accumulator
    """
    i = pl.program_id(0)

    @pl.when(i == 0)
    def _init():
        acc_ref[...] = jnp.zeros_like(acc_ref)

    x = batch_ref[...].astype(jnp.float32)                 # (N, D), D on lanes
    n_rows = x.shape[0]

    idx = idx_ref[...]                                     # (t_tile, 3) int32
    a_idx = idx[:, 0:1]                                    # (t_tile, 1)
    p_idx = idx[:, 1:2]
    n_idx = idx[:, 2:3]

    # Gather a/p/n rows for the whole tile via 0/1 selection matmuls on the
    # MXU (exact at HIGHEST precision since selectors are 0/1). This replaces
    # the old per-triplet (1, D) row loads (1/8 sublane utilization) and the
    # per-triplet cross-lane reduces.
    row_iota = jax.lax.broadcasted_iota(jnp.int32, (t_tile, n_rows), 1)
    dot = functools.partial(jnp.dot, preferred_element_type=jnp.float32,
                            precision=jax.lax.Precision.HIGHEST)
    a = dot((row_iota == a_idx).astype(jnp.float32), x)    # (t_tile, D)
    p = dot((row_iota == p_idx).astype(jnp.float32), x)
    n = dot((row_iota == n_idx).astype(jnp.float32), x)

    # Fused distance difference: one lane reduce per tile instead of two.
    sq = (a - p) ** 2 - (a - n) ** 2                       # (t_tile, D)
    diff = jnp.sum(sq, axis=-1, keepdims=True)             # (t_tile, 1)

    # Mask padded triplet slots (tail of the last tile).
    t_ids = i * t_tile + jax.lax.broadcasted_iota(jnp.int32, (t_tile, 1), 0)
    loss = jnp.where(t_ids < num_triplets,
                     jnp.maximum(diff + jnp.float32(margin), 0.0),
                     0.0)

    # Vreg-shaped accumulator: one add per tile, no (1,1) RMW chain.
    acc_ref[...] += loss

    @pl.when(i == pl.num_programs(0) - 1)
    def _finalize():
        total = jnp.sum(acc_ref[...], axis=0, keepdims=True)   # (1, 1)
        out_ref[...] = total / jnp.float32(num_triplets)


def triplet_loss_pallas(batch, triplets, margin=0.2):
    """batch: f32[N, D] embeddings; triplets: i32[T, 3] (anchor, pos, neg)."""
    N, D = batch.shape
    T = int(triplets.shape[0])
    if T == 0:
        # Degenerate empty-miner output: avoid divide-by-zero.
        return jnp.float32(0.0)

    # 256 triplet rows per tile feeds the 2x256x256 MXU on v6e/v7x; for small
    # T just round up to a sublane multiple (v5e's 128x128 MXU is also fine).
    t_tile = min(256, _round_up(T, 8))
    num_tiles = pl.cdiv(T, t_tile)
    t_pad = num_tiles * t_tile

    # Clamp (defensive: VMEM reads have no bounds check) and pad to the tile
    # grid; padded slots point at row 0 and are masked out inside the kernel.
    idx = jnp.clip(triplets.astype(jnp.int32), 0, N - 1)
    idx = jnp.pad(idx, ((0, t_pad - T), (0, 0)))

    kernel = functools.partial(_triplet_loss_kernel, num_triplets=T,
                               margin=float(margin), t_tile=t_tile)

    out = pl.pallas_call(
        kernel,
        out_shape=jax.ShapeDtypeStruct((1, 1), jnp.float32),
        grid_spec=pltpu.PrefetchScalarGridSpec(
            num_scalar_prefetch=0,
            grid=(num_tiles,),
            in_specs=[
                pl.BlockSpec((t_tile, 3), lambda i: (i, 0)),   # triplet indices
                # Full batch stays resident in VMEM across all tiles.
                # TODO(synk): for production-sized batches (v7x: 64 MiB VMEM),
                # tile N over a grid axis or use memory_space=pl.ANY + manual DMA.
                pl.BlockSpec((N, D), lambda i: (0, 0)),
            ],
            out_specs=pl.BlockSpec((1, 1), lambda i: (0, 0)),
            scratch_shapes=[pltpu.VMEM((t_tile, 1), jnp.float32)],
        ),
        compiler_params=pltpu.CompilerParams(
            # The accumulator is carried across the triplet-tile axis.
            dimension_semantics=("arbitrary",),
            vmem_limit_bytes=32 * 1024 * 1024,
        ),
    )(idx, batch)
    return out[0, 0]


def triplet_loss_ref(batch, triplets, margin):
    a = batch[triplets[:, 0]]
    p = batch[triplets[:, 1]]
    n = batch[triplets[:, 2]]
    d_ap = jnp.sum((a - p) ** 2, axis=1)
    d_an = jnp.sum((a - n) ** 2, axis=1)
    return jnp.mean(jnp.maximum(d_ap - d_an + margin, 0.0))


def _deterministic_batchminer(labels):
    # TODO(synk): real batch-mining ops (random/semihard/distance) are
    # data-dependent host-side sampling; this deterministic surrogate just
    # enumerates valid (anchor, positive, negative) triples.
    n = len(labels)
    triplets = []
    for a in range(n):
        for p in range(n):
            if p == a or labels[p] != labels[a]:
                continue
            negs = [q for q in range(n) if labels[q] != labels[a]]
            triplets.append((a, p, negs[(a + p) % len(negs)]))
    return np.asarray(triplets, dtype=np.int32)


if __name__ == "__main__":
    key = jax.random.PRNGKey(0)
    N, D = 8, 128                      # small batch of 128-d embeddings
    MARGIN = 0.2                       # opt.loss_triplet_margin

    batch = jax.random.normal(key, (N, D), dtype=jnp.float32)
    batch = batch / jnp.linalg.norm(batch, axis=1, keepdims=True)

    labels = np.array([0, 0, 1, 1, 2, 2, 3, 3], dtype=np.int32)
    triplets = jnp.asarray(_deterministic_batchminer(labels))

    loss = triplet_loss_pallas(batch, triplets, margin=MARGIN)
    jax.block_until_ready(loss)

    ref = triplet_loss_ref(batch, triplets, MARGIN)
    assert np.allclose(np.asarray(loss), np.asarray(ref), rtol=1e-5, atol=1e-5), (
        f"pallas={loss} ref={ref}"
    )
    print("KERNEL_OK")
</pallas_src>

<mosaic_0001>
module attributes {stable_mosaic.version = 11 : i64} {
  func.func @_triplet_loss_kernel(%arg0: i32, %arg1: memref<8x3xi32, #tpu.memory_space<vmem>>, %arg2: memref<8x128xf32, #tpu.memory_space<vmem>>, %arg3: memref<1x1xf32, #tpu.memory_space<vmem>>, %arg4: memref<8x1xf32, #tpu.memory_space<vmem>>) attributes {dimension_semantics = [#tpu.dimension_semantics<arbitrary>], iteration_bounds = array<i64: 1>, scalar_prefetch = 0 : i64, scratch_operands = 1 : i64, tpu.core_type = #tpu.core_type<tc>, window_params = [{transform_indices = @transform_0, window_bounds = array<i64: 8, 3>}, {pipeline_mode = #tpu.pipeline_mode<synchronous>, transform_indices = @transform_1, window_bounds = array<i64: 8, 128>}, {pipeline_mode = #tpu.pipeline_mode<synchronous>, transform_indices = @transform_2, window_bounds = array<i64: 1, 1>}]} {
    %c0_i32 = arith.constant 0 : i32
    %0 = arith.cmpi eq, %arg0, %c0_i32 : i32
    %1 = arith.extui %0 : i1 to i32
    %c0_i32_0 = arith.constant 0 : i32
    %2 = arith.cmpi ne, %1, %c0_i32_0 : i32
    scf.if %2 {
      %cst_17 = arith.constant 0.000000e+00 : f32
      %49 = vector.broadcast %cst_17 : f32 to vector<8x1xf32>
      %c0_18 = arith.constant 0 : index
      %c0_19 = arith.constant 0 : index
      %50 = vector.load %arg4[%c0_18, %c0_19] : memref<8x1xf32, #tpu.memory_space<vmem>>, vector<8x1xf32>
      tpu.vector_store %arg4[%c0_18, %c0_19], %49 {strides = array<i32>} : memref<8x1xf32, #tpu.memory_space<vmem>>, vector<8x1xf32>,
    } else {
    }
    %c0 = arith.constant 0 : index
    %c0_1 = arith.constant 0 : index
    %3 = vector.load %arg2[%c0, %c0_1] : memref<8x128xf32, #tpu.memory_space<vmem>>, vector<8x128xf32>
    %c0_2 = arith.constant 0 : index
    %c0_3 = arith.constant 0 : index
    %4 = vector.load %arg1[%c0_2, %c0_3] : memref<8x3xi32, #tpu.memory_space<vmem>>, vector<8x3xi32>
    %5 = vector.extract_strided_slice %4 {offsets = [0, 0], sizes = [8, 1], strides = [1, 1]} : vector<8x3xi32> to vector<8x1xi32>
    %6 = vector.extract_strided_slice %4 {offsets = [0, 1], sizes = [8, 1], strides = [1, 1]} : vector<8x3xi32> to vector<8x1xi32>
    %7 = vector.extract_strided_slice %4 {offsets = [0, 2], sizes = [8, 1], strides = [1, 1]} : vector<8x3xi32> to vector<8x1xi32>
    %8 = tpu.iota {dimensions = array<i32: 1>} : vector<8x8xi32>
    %9 = vector.broadcast %5 : vector<8x1xi32> to vector<8x8xi32>
    %10 = arith.cmpi eq, %8, %9 : vector<8x8xi32>
    %11 = arith.extui %10 : vector<8x8xi1> to vector<8x8xi32>
    %12 = arith.sitofp %11 : vector<8x8xi32> to vector<8x8xf32>
    %cst = arith.constant dense<0.000000e+00> : vector<8x128xf32>
    %13 = tpu.matmul %12, %3, %cst {dimension_numbers = #tpu.dot_dimension_numbers<[1], [0], [0], [1], [0, 0, 1, 1], [], []>, precision = #tpu.contract_precision<fp32>} : vector<8x8xf32>, vector<8x128xf32>, vector<8x128xf32> -> vector<8x128xf32>
    %14 = vector.broadcast %6 : vector<8x1xi32> to vector<8x8xi32>
    %15 = arith.cmpi eq, %8, %14 : vector<8x8xi32>
    %16 = arith.extui %15 : vector<8x8xi1> to vector<8x8xi32>
    %17 = arith.sitofp %16 : vector<8x8xi32> to vector<8x8xf32>
    %cst_4 = arith.constant dense<0.000000e+00> : vector<8x128xf32>
    %18 = tpu.matmul %17, %3, %cst_4 {dimension_numbers = #tpu.dot_dimension_numbers<[1], [0], [0], [1], [0, 0, 1, 1], [], []>, precision = #tpu.contract_precision<fp32>} : vector<8x8xf32>, vector<8x128xf32>, vector<8x128xf32> -> vector<8x128xf32>
    %19 = vector.broadcast %7 : vector<8x1xi32> to vector<8x8xi32>
    %20 = arith.cmpi eq, %8, %19 : vector<8x8xi32>
    %21 = arith.extui %20 : vector<8x8xi1> to vector<8x8xi32>
    %22 = arith.sitofp %21 : vector<8x8xi32> to vector<8x8xf32>
    %cst_5 = arith.constant dense<0.000000e+00> : vector<8x128xf32>
    %23 = tpu.matmul %22, %3, %cst_5 {dimension_numbers = #tpu.dot_dimension_numbers<[1], [0], [0], [1], [0, 0, 1, 1], [], []>, precision = #tpu.contract_precision<fp32>} : vector<8x8xf32>, vector<8x128xf32>, vector<8x128xf32> -> vector<8x128xf32>
    %24 = arith.subf %13, %18 : vector<8x128xf32>
    %25 = arith.mulf %24, %24 : vector<8x128xf32>
    %26 = arith.subf %13, %23 : vector<8x128xf32>
    %27 = arith.mulf %26, %26 : vector<8x128xf32>
    %28 = arith.subf %25, %27 : vector<8x128xf32>
    %cst_6 = arith.constant dense<0.000000e+00> : vector<8xf32>
    %29 = vector.multi_reduction <add>, %28, %cst_6 [1] : vector<8x128xf32> to vector<8xf32>
    %30 = vector.shape_cast %29 : vector<8xf32> to vector<8x1xf32>
    %c8_i32 = arith.constant 8 : i32
    %31 = arith.muli %arg0, %c8_i32 : i32
    %32 = tpu.iota {dimensions = array<i32: 0>} : vector<8x1xi32>
    %33 = vector.broadcast %31 : i32 to vector<8x1xi32>
    %34 = arith.addi %33, %32 : vector<8x1xi32>
    %c8_i32_7 = arith.constant 8 : i32
    %35 = vector.broadcast %c8_i32_7 : i32 to vector<8x1xi32>
    %36 = arith.cmpi slt, %34, %35 : vector<8x1xi32>
    %cst_8 = arith.constant 2.000000e-01 : f32
    %37 = vector.broadcast %cst_8 : f32 to vector<8x1xf32>
    %38 = arith.addf %30, %37 : vector<8x1xf32>
    %cst_9 = arith.constant 0.000000e+00 : f32
    %39 = vector.broadcast %cst_9 : f32 to vector<8x1xf32>
    %40 = arith.maximumf %38, %39 : vector<8x1xf32>
    %cst_10 = arith.constant 0.000000e+00 : f32
    %41 = vector.broadcast %cst_10 : f32 to vector<8x1xf32>
    %42 = arith.select %36, %40, %41 : vector<8x1xi1>, vector<8x1xf32>
    %c0_11 = arith.constant 0 : index
    %c0_12 = arith.constant 0 : index
    %43 = vector.load %arg4[%c0_11, %c0_12] : memref<8x1xf32, #tpu.memory_space<vmem>>, vector<8x1xf32>
    %44 = arith.addf %43, %42 : vector<8x1xf32>
    %c0_13 = arith.constant 0 : index
    %c0_14 = arith.constant 0 : index
    %45 = vector.load %arg4[%c0_13, %c0_14] : memref<8x1xf32, #tpu.memory_space<vmem>>, vector<8x1xf32>
    tpu.vector_store %arg4[%c0_13, %c0_14], %44 {strides = array<i32>} : memref<8x1xf32, #tpu.memory_space<vmem>>, vector<8x1xf32>,
    %c0_i32_15 = arith.constant 0 : i32
    %46 = arith.cmpi eq, %arg0, %c0_i32_15 : i32
    %47 = arith.extui %46 : i1 to i32
    %c0_i32_16 = arith.constant 0 : i32
    %48 = arith.cmpi ne, %47, %c0_i32_16 : i32
    scf.if %48 {
      %c0_17 = arith.constant 0 : index
      %c0_18 = arith.constant 0 : index
      %49 = vector.load %arg4[%c0_17, %c0_18] : memref<8x1xf32, #tpu.memory_space<vmem>>, vector<8x1xf32>
      %cst_19 = arith.constant dense<0.000000e+00> : vector<1xf32>
      %50 = vector.multi_reduction <add>, %49, %cst_19 [0] : vector<8x1xf32> to vector<1xf32>
      %51 = vector.shape_cast %50 : vector<1xf32> to vector<1x1xf32>
      %cst_20 = arith.constant 8.000000e+00 : f32
      %52 = vector.broadcast %cst_20 : f32 to vector<1x1xf32>
      %53 = arith.divf %51, %52 : vector<1x1xf32>
      %c0_21 = arith.constant 0 : index
      %c0_22 = arith.constant 0 : index
      %54 = vector.load %arg3[%c0_21, %c0_22] : memref<1x1xf32, #tpu.memory_space<vmem>>, vector<1x1xf32>
      tpu.vector_store %arg3[%c0_21, %c0_22], %53 {strides = array<i32>} : memref<1x1xf32, #tpu.memory_space<vmem>>, vector<1x1xf32>,
    } else {
    }
    return
  }
  func.func @transform_0(%arg0: i32) -> (i32, i32) {
    %c0_i32 = arith.constant 0 : i32
    %c0_i32_0 = arith.constant 0 : i32
    return %arg0, %c0_i32 : i32, i32
  }
  func.func @transform_1(%arg0: i32) -> (i32, i32) {
    %c0_i32 = arith.constant 0 : i32
    %c0_i32_0 = arith.constant 0 : i32
    %c0_i32_1 = arith.constant 0 : i32
    return %c0_i32, %c0_i32_0 : i32, i32
  }
  func.func @transform_2(%arg0: i32) -> (i32, i32) {
    %c0_i32 = arith.constant 0 : i32
    %c0_i32_0 = arith.constant 0 : i32
    %c0_i32_1 = arith.constant 0 : i32
    return %c0_i32, %c0_i32_0 : i32, i32
  }
}

</mosaic_0001>

<bundles_post_ra>
// kernel: tpu_custom_call.1
= control target key start
LH: loop header
LB: loop body
LE: loop exit
PB: predicated region body
PF: predicated region fallthrough
CT: control target
= control target key end

     0   :  { %s1784_s0 = inlined_call_operand.vmem [shape: s32[8,3], index: 0, kind: input, shape index: {}]   ;;  %s1785_s1 = inlined_call_operand.vmem [shape: f32[8,128], index: 1, kind: input, shape index: {}]   ;;  %s1786_s2 = inlined_call_operand.hbm [shape: f32[1,1], index: 2, kind: output, shape index: {}]  }
   0x1   :  { %v19_v0 = vld [vmem:[%s1784_s0] sm:$0xff] }
   0x2   :  { %7 = vsyncpa [#allocation4], 0  ;;  %v1638_v1 = vmov 0   ;;  %v1639_v2 = vmov 2   ;;  %v1640_v3 = vmov 0.0   ;;  %v18_v4 = vld [vmem:[%s1785_s1] sm:$0xff]  ;;  %v20_v7 = vlaneseq }
   0x3   :  { %1610 = vset.pattern.permute.xlu0 %v1638_v1  ;;  %1612 = vset.pattern.permute.xlu1 %v1639_v2  ;;  %v1641_v5 = vmov 1   ;;  %v1667_v6 = vand.u32 4294901760, %v18_v4  ;;  %vm1642_vm0 = vmmov 0   ;;  %vm28_vm1 = vcmask 64512   ;;  %s1643_s0 = smov [#allocation3]  }
   0x4   :  { %23 = vperm.xlu0 %1610, %v19_v0   ;;  %934 = vperm.xlu1 %1612, %v19_v0   ;;  %v21_v8 = vand.u32 127, %v20_v7  ;;  %vm16_vm5 = vcmask 7168   ;;  %s1429_s1 = sshll.u32 %s1643_s0, 4  ;;  %vm1421_vm6 = vcmask 0   ;;  %s1430_s1 = int_to_ptr.vmem [resolvable:$true] %s1429_s1 }
   0x5   :  { %1500 = vmatprep.subr.mxu0 %v1640_v3  ;;  %1485 = vmatprep.subr.mxu1 %v1640_v3  ;;  %v1678_v9 = vsub.f32 %v18_v4, %v1667_v6  ;;  %17 = vst.msk [vmem:[#allocation2] sm:$0xff] %vm16_vm5, %v1640_v3  ;;  %s1614_s13 = scalar_lea.vmem %s1430_s1, 16  ;;  %s1618_s14 = scalar_lea.vmem %s1430_s1, 32 }
   0x6   :  { %1502 = vmatprep.mubr.msk.f32.mxu0 %vm1642_vm0, %v1640_v3  ;;  %1487 = vmatprep.mubr.msk.f32.mxu1 %vm1642_vm0, %v1640_v3  ;;  %p1615_p0 = scmp.ne.s32.totalorder %s1430_s1, %s1614_s13  ;;  %p1619_p1 = scmp.lt.s32.totalorder %s1430_s1, %s1430_s1 }
   0x7   :  { %1501 = vmatpush3.msra.mxu0 %v1667_v6  ;;  %1486 = vmatpush3.msra.mxu1 %v1667_v6  ;;  %v1681_v12 = vand.u32 4294901760, %v1678_v9  ;;  %p1620_p2 = scmp.lt.s32.totalorder %s1618_s14, %s1614_s13 }
   0x8   :  { %1611 = vset.pattern.permute.xlu0 %v1641_v5  ;;  %1490 = vmatprep.subr.mxu1 %v1640_v3 }
   0x9   :  { %479 = vperm.xlu0 %1611, %v19_v0   ;;  %1505 = vmatprep.subr.mxu0 %v1640_v3  ;;  %v112_v16 = vsub.f32 %v1678_v9, %v1681_v12  ;;  %p1621_p3 = por %p1620_p2, %p1619_p1 }
   0xb   :  { %v113_v21 = vand.u32 4294901760, %v112_v16  ;;  %p1622_p4 = pnand %p1621_p3, %p1615_p0 }
   0xc   :  { %v1404_v50 = vld [vmem:[#allocation2] sm:$0xff] }
   0xd   :  { %1613 = vset.pattern.permute.xlu0 %v1639_v2 }
  0x83   :  { %v24_v10 = vpop.permute.xlu0 %23  ;;  %v935_v11 = vpop.permute.xlu1 %934 }
  0x84   :  { %vm25_vm2 = vcmp.eq.s32.totalorder %v21_v8, %v24_v10  ;;  %vm936_vm3 = vcmp.eq.s32.totalorder %v21_v8, %v935_v11 }
  0x85   :  { %v1437_v13 = vsel %vm25_vm2, 1.0, %v1640_v3  ;;  %v1688_v18 = vsel %vm936_vm3, 1.0, %v1640_v3 }
  0x86   :  { %v30_v14 = vsel %vm28_vm1, %v1437_v13, 0  ;;  %v940_v22 = vsel %vm28_vm1, %v1688_v18, 0 }
  0x87   :  { %v99_v15 = vsub.f32 %v30_v14, %v30_v14  ;;  %v1009_v24 = vsub.f32 %v940_v22, %v940_v22 }
  0x88   :  { %v480_v19 = vpop.permute.xlu0 %479 }
  0x89   :  { %v100_v17 = vand.u32 4294901760, %v99_v15  ;;  %vm481_vm4 = vcmp.eq.s32.totalorder %v21_v8, %v480_v19  ;;  %v1010_v27 = vand.u32 4294901760, %v1009_v24 }
  0x8a   :  { %v1697_v25 = vsel %vm481_vm4, 1.0, %v1640_v3 }
  0x8b   :  { %1503 = vmatmul.mubr.f32.vlgmr.msra.gmra.mrb[0].mxu0 %v100_v17  ;;  %v101_v20 = vsub.f32 %v99_v15, %v100_v17  ;;  %v485_v26 = vsel %vm28_vm1, %v1697_v25, 0  ;;  %v1011_v29 = vsub.f32 %v1009_v24, %v1010_v27 }
  0x8c   :  { %1506 = vmatpush3.msra.mxu0 %v1681_v12  ;;  %1507 = vmatprep.mubr.msk.f32.mxu0 %vm1642_vm0, %v1640_v3  ;;  %v554_v28 = vsub.f32 %v485_v26, %v485_v26 }
  0x8d   :  { %v102_v23 = vand.u32 4294901760, %v101_v20  ;;  %1510 = vmatprep.subr.mxu0 %v1640_v3  ;;  %v1012_v31 = vand.u32 4294901760, %v1011_v29 }
  0x8e   :  { %v555_v30 = vand.u32 4294901760, %v554_v28 }
  0x8f   :  { %1488 = vmatmul.mubr.f32.vlgmr.msra.gmra.mrb[0].mxu1 %v102_v23 }
  0x90   :  { %1491 = vmatpush3.msra.mxu1 %v113_v21  ;;  %1492 = vmatprep.mubr.msk.f32.mxu1 %vm1642_vm0, %v1640_v3  ;;  %v556_v32 = vsub.f32 %v554_v28, %v555_v30 }
  0x91   :  { %1495 = vmatprep.subr.mxu1 %v1640_v3 }
  0x92   :  { %v557_v33 = vand.u32 4294901760, %v556_v32 }
  0x93   :  { %1508 = vmatmul.mubr.msk.f32.vlgmr.msra.gmra.mrb[0].mxu0 %vm28_vm1, %v1437_v13 }
  0x94   :  { %1511 = vmatpush3.msra.mxu0 %v1667_v6  ;;  %1512 = vmatprep.mubr.msk.f32.mxu0 %vm1642_vm0, %v1640_v3 }
  0x95   :  { %1545 = vmatprep.subr.mxu0 %v1640_v3 }
  0x97   :  { %1493 = vmatmul.mubr.msk.f32.vlgmr.msra.gmra.mrb[0].mxu1 %vm28_vm1, %v1437_v13 }
  0x98   :  { %1496 = vmatpush3.msra.mxu1 %v1678_v9  ;;  %1497 = vmatprep.mubr.msk.f32.mxu1 %vm1642_vm0, %v1640_v3 }
  0x99   :  { %1515 = vmatprep.subr.mxu1 %v1640_v3 }
  0x9b   :  { %1513 = vmatmul.mubr.msk.f32.vlgmr.msra.gmra.mrb[0].mxu0 %vm28_vm1, %v1437_v13 }
  0x9c   :  { %1546 = vmatpush3.msra.mxu0 %v1667_v6  ;;  %1547 = vmatprep.mubr.msk.f32.mxu0 %vm1642_vm0, %v1640_v3 }
  0x9d   :  { %1550 = vmatprep.subr.mxu0 %v1640_v3 }
  0x9f   :  { %1498 = vmatmul.mubr.f32.vlgmr.msra.gmra.mrb[0].mxu1 %v99_v15  ;;  %1548 = vmatmul.mubr.f32.vlgmr.msra.gmra.mrb[2].mxu0 %v1012_v31 }
  0xa0   :  { %1516 = vmatpush3.msra.mxu1 %v1667_v6  ;;  %1517 = vmatprep.mubr.msk.f32.mxu1 %vm1642_vm0, %v1640_v3 }
  0xa1   :  { %1520 = vmatprep.subr.mxu1 %v1640_v3  ;;  %1551 = vmatpush3.msra.mxu0 %v113_v21 }
  0xa2   :  { %1552 = vmatprep.mubr.msk.f32.mxu0 %vm1642_vm0, %v1640_v3  ;;  %1555 = vmatprep.subr.mxu0 %v1640_v3 }
  0xa3   :  { %1518 = vmatmul.mubr.f32.vlgmr.msra.gmra.mrb[2].mxu1 %v557_v33 }
  0xa4   :  { %1521 = vmatpush3.msra.mxu1 %v113_v21  ;;  %1522 = vmatprep.mubr.msk.f32.mxu1 %vm1642_vm0, %v1640_v3 }
  0xa5   :  { %1525 = vmatprep.subr.mxu1 %v1640_v3 }
  0xa7   :  { %1553 = vmatmul.mubr.msk.f32.vlgmr.msra.gmra.mrb[2].mxu0 %vm28_vm1, %v1688_v18 }
  0xa8   :  { %1556 = vmatpush3.msra.mxu0 %v1678_v9  ;;  %1557 = vmatprep.mubr.msk.f32.mxu0 %vm1642_vm0, %v1640_v3 }
  0xa9   :  { %1560 = vmatprep.subr.mxu0 %v1640_v3 }
  0xab   :  { %1523 = vmatmul.mubr.msk.f32.vlgmr.msra.gmra.mrb[2].mxu1 %vm28_vm1, %v1697_v25 }
  0xac   :  { %1526 = vmatpush3.msra.mxu1 %v1678_v9  ;;  %1527 = vmatprep.mubr.msk.f32.mxu1 %vm1642_vm0, %v1640_v3 }
  0xad   :  { %1530 = vmatprep.subr.mxu1 %v1640_v3 }
  0xaf   :  { %1558 = vmatmul.mubr.f32.vlgmr.msra.gmra.mrb[2].mxu0 %v1009_v24 }
  0xb0   :  { %1561 = vmatpush3.msra.mxu0 %v1667_v6  ;;  %1562 = vmatprep.mubr.msk.f32.mxu0 %vm1642_vm0, %v1640_v3 }
  0xb1   :  { %1565 = vmatprep.subr.mxu0 %v1640_v3 }
  0xb3   :  { %1528 = vmatmul.mubr.f32.vlgmr.msra.gmra.mrb[2].mxu1 %v554_v28 }
  0xb4   :  { %1531 = vmatpush3.msra.mxu1 %v1667_v6  ;;  %1532 = vmatprep.mubr.msk.f32.mxu1 %vm1642_vm0, %v1640_v3 }
  0xb5   :  { %1535 = vmatprep.subr.mxu1 %v1640_v3 }
  0xb7   :  { %1563 = vmatmul.mubr.f32.vlgmr.msra.gmra.mrb[2].mxu0 %v1010_v27 }
  0xb8   :  { %1566 = vmatpush3.msra.mxu0 %v1681_v12  ;;  %1567 = vmatprep.mubr.msk.f32.mxu0 %vm1642_vm0, %v1640_v3 }
  0xb9   :  { %1570 = vmatprep.subr.mxu0 %v1640_v3 }
  0xbb   :  { %1533 = vmatmul.mubr.f32.vlgmr.msra.gmra.mrb[2].mxu1 %v555_v30 }
  0xbc   :  { %1536 = vmatpush3.msra.mxu1 %v1681_v12  ;;  %1537 = vmatprep.mubr.msk.f32.mxu1 %vm1642_vm0, %v1640_v3 }
  0xbd   :  { %1540 = vmatprep.subr.mxu1 %v1640_v3 }
  0xbf   :  { %1568 = vmatmul.mubr.msk.f32.vlgmr.msra.gmra.mrb[2].mxu0 %vm28_vm1, %v1688_v18 }
  0xc0   :  { %1571 = vmatpush3.msra.mxu0 %v1667_v6  ;;  %1572 = vmatprep.mubr.msk.f32.mxu0 %vm1642_vm0, %v1640_v3 }
  0xc3   :  { %1538 = vmatmul.mubr.msk.f32.vlgmr.msra.gmra.mrb[2].mxu1 %vm28_vm1, %v1697_v25 }
  0xc4   :  { %1541 = vmatpush3.msra.mxu1 %v1667_v6  ;;  %1542 = vmatprep.mubr.msk.f32.mxu1 %vm1642_vm0, %v1640_v3 }
  0xc7   :  { %1573 = vmatmul.mubr.msk.f32.vlgmr.msra.gmra.mrb[2].mxu0 %vm28_vm1, %v1688_v18 }
  0xcb   :  { %1543 = vmatmul.mubr.msk.f32.vlgmr.msra.gmra.mrb[2].mxu1 %vm28_vm1, %v1697_v25 }
 0x16e   :  { %v474_v34 = vpop.f32.mrb[0].mxu0 }
 0x16f   :  { %v1514_v35 = vpop.f32.mrb[1].mxu0 }
 0x172   :  { %v254_v36 = vpop.f32.mrb[0].mxu1 }
 0x173   :  { %v1575_v37 = vadd.f32 %v474_v34, %v254_v36  ;;  %v1499_v38 = vpop.f32.mrb[1].mxu1 }
 0x19a   :  { %v1384_v39 = vpop.f32.mrb[2].mxu0 }
 0x19b   :  { %v1390_v40 = vsub.f32 %v1575_v37, %v1384_v39  ;;  %v1574_v41 = vpop.f32.mrb[3].mxu0 }
 0x19d   :  { %v1391_v45 = vmul.f32 %v1390_v40, %v1390_v40 }
 0x19e   :  { %v929_v42 = vpop.f32.mrb[2].mxu1 }
 0x19f   :  { %v1388_v43 = vsub.f32 %v1575_v37, %v929_v42  ;;  %v1544_v44 = vpop.f32.mrb[3].mxu1 }
 0x1a1   :  { %v1389_v46 = vmul.f32 %v1388_v43, %v1388_v43 }
 0x1a3   :  { %v1392_v47 = vsub.f32 %v1389_v46, %v1391_v45 }
 0x1a5   :  { %1393 = vadd.xlane.f32.xlu1 %v1392_v47 }
 0x232   :  { %v1394_v48 = vpop.xlane.xlu1 %1393 }
 0x233   :  { %v1401_v49 = vadd.f32 0.2, %v1394_v48 }
 0x235   :  { %v1402_v51 = vmax.f32 %v1401_v49, 0.0 }
 0x237   :  { %v1405_v52 = vadd.f32 %v1404_v50, %v1402_v51 }
 0x239   :  { %1407 = vst.msk [vmem:[#allocation2] sm:$0xff] %vm16_vm5, %v1405_v52 }
 0x240   :  { %v1411_v53 = vld [vmem:[#allocation2] sm:$0xff] }
 0x241   :  { %v1412_v54 = vsel %vm16_vm5, %v1411_v53, 0.0 }
 0x242   :  { %v1413_v55 = vrot.slane %v1412_v54, 4 }
 0x244   :  { %v1414_v56 = vadd.f32 %v1413_v55, %v1412_v54 }
 0x246   :  { %v1415_v57 = vrot.slane %v1414_v56, 2 }
 0x248   :  { %v1416_v58 = vadd.f32 %v1415_v57, %v1414_v56 }
 0x24a   :  { %v1417_v59 = vrot.slane %v1416_v58, 1 }
 0x24c   :  { %v1418_v60 = vadd.f32 %v1417_v59, %v1416_v58 }
 0x24e   :  { %v1420_v61 = vmul.f32 0.125, %v1418_v60 }
 0x250   :  { %1422 = vst.msk [vmem:[#allocation3] sm:$0x1] %vm1421_vm6, %v1420_v61 }
 0x251   :  { %1625 = shalt.err (!%p1622_p4)
}
 0x252   :  { %s1626_s17 = scalar_lea.hbm %s1786_s2, 16 }
 0x253   :  { %p1627_p5 = scmp.ne.s32.totalorder %s1786_s2, %s1626_s17  ;;  %p1630_p6 = scmp.lt.u32.totalorder %s1626_s17, %s1786_s2 }
 0x255   :  { %p1632_p7 = pnand %p1630_p6, %p1627_p5 }
 0x257   :  { %1635 = shalt.err (!%p1632_p7)
}
 0x258   :  { %1432 = dma.vmem_to_hbm [thread:$0]  %s1430_s1, 16, %s1786_s2, [#allocation4]  }
 0x259   :  { %1636 = dma.done.wait [#allocation4], 16  }
 0x25a   :  { %1637 = vsyncadd [#allocation4], 4294967280 }
 0x25b   :  { %1436 = vsyncpa [#allocation4], 1 }

</bundles_post_ra>
